<compile_context>
chip_gen: v7x
topology: tpu7x:2x2x1
jax: 0.10.0
libtpu: 0.0.40
codegen_flags: <defaults>
</compile_context>

<pallas_src>
import jax
import jax.numpy as jnp
from jax.experimental import pallas as pl
from jax.experimental.pallas import tpu as pltpu


def _round_up(x: int, m: int) -> int:
    return ((x + m - 1) // m) * m


def _round_down(x: int, m: int) -> int:
    return (x // m) * m


def _make_pool_kernel(hw_true: int, hw_chunk: int, n_k: int):
    """Streaming avg/max pooling over the chunked last axis (no HBM padding)."""
    inv_hw = 1.0 / float(hw_true)
    # Static tail geometry of the last hw chunk (grid is static).
    rem = hw_true - (n_k - 1) * hw_chunk          # valid cols in last chunk: 1..hw_chunk
    full_cols = _round_down(rem, 128)             # lane-aligned valid prefix
    tail_cols = rem - full_cols                   # ragged remainder: 0..127

    def kernel(x_ref, o_ref, sum_ref, max_ref):
        # x_ref: (RT, HWC) input block (native dtype)
        # o_ref: (RT, 2) pooled output block (f32): col 0 = avg, col 1 = max
        # sum_ref / max_ref: (RT, 1) f32 running accumulators (VMEM scratch)
        k = pl.program_id(1)

        @pl.when(k == 0)
        def _init():
            sum_ref[...] = jnp.zeros_like(sum_ref)
            max_ref[...] = jnp.full_like(max_ref, -jnp.inf)

        def accumulate(x_sum, x_max):
            sum_ref[...] += jnp.sum(x_sum, axis=-1, keepdims=True)
            max_ref[...] = jnp.maximum(
                max_ref[...], jnp.max(x_max, axis=-1, keepdims=True))

        if rem == hw_chunk:
            # H*W divides evenly into chunks: every chunk fully valid, no masking.
            x = x_ref[...].astype(jnp.float32)
            accumulate(x, x)
        else:
            # Hot path: all chunks except the last are fully valid (no iota/select).
            @pl.when(k < n_k - 1)
            def _full_chunk():
                x = x_ref[...].astype(jnp.float32)
                accumulate(x, x)

            # Last chunk: lane-aligned valid prefix unmasked, then one masked
            # (RT, 128) boundary stripe (tiny temps; zeros for sum, -inf for max).
            @pl.when(k == n_k - 1)
            def _tail_chunk():
                if full_cols > 0:
                    x = x_ref[:, :full_cols].astype(jnp.float32)
                    accumulate(x, x)
                if tail_cols > 0:
                    xb = x_ref[:, full_cols:full_cols + 128].astype(jnp.float32)
                    lane = jax.lax.broadcasted_iota(jnp.int32, (1, 128), 1)
                    valid = lane < tail_cols
                    accumulate(jnp.where(valid, xb, 0.0),
                               jnp.where(valid, xb, -jnp.inf))

        @pl.when(k == n_k - 1)
        def _finalize():
            o_ref[:, 0:1] = (sum_ref[...] * inv_hw).astype(o_ref.dtype)
            o_ref[:, 1:2] = max_ref[...].astype(o_ref.dtype)

    return kernel


def channel_attention(x, w1, w2, *, row_tile_cap=512, hw_chunk_cap=None,
                      target_block_bytes=4 << 20):
    """ChannelAttention forward.

    x : (B, C, H, W) NCHW input (f32 or bf16)
    w1: (C_red, C)   fc1 weight (Conv2d 1x1, bias=False)
    w2: (C, C_red)   fc2 weight (Conv2d 1x1, bias=False)
    returns (B, C, 1, 1) sigmoid attention weights (dtype of x)
    """
    B, C, H, W = x.shape
    HW = H * W
    R = B * C
    itemsize = int(jnp.dtype(x.dtype).itemsize)

    # ---- tile selection (no HBM-side padding; tails handled in-kernel) ----
    row_tile_cap = max(8, _round_down(int(row_tile_cap), 8))
    if R <= 8:
        RT = R  # single full-extent row block (equal-to-dim is allowed)
    else:
        # Keep >= 2 row tiles so both v7x TensorCores get work on the
        # "parallel" row axis; RT stays a multiple of 8.
        RT = min(_round_up(R, 8), row_tile_cap, _round_up((R + 1) // 2, 8))

    if hw_chunk_cap is None:
        # Dtype-aware chunk: target ~4 MiB blocks (bf16 gets 2x the columns).
        hw_chunk_cap = max(128, _round_down(target_block_bytes // (RT * itemsize), 128))
    else:
        hw_chunk_cap = max(128, _round_down(int(hw_chunk_cap), 128))
    HWC = min(_round_up(HW, 128), hw_chunk_cap)

    nr = pl.cdiv(R, RT)
    nk = pl.cdiv(HW, HWC)

    # Contiguous NCHW -> (B*C, H*W) is a pure metadata reshape (no HBM copy).
    x2 = x.reshape(R, HW)

    block_bytes = RT * HWC * itemsize
    # Double-buffered input + f32 upcast temp + scratch, with headroom;
    # >= 32 MiB covers v5e's 16 MiB scoped default, <= 48 MiB stays safely
    # under v7x's 64 MiB physical VMEM.
    vmem_limit = int(min(48 << 20, max(32 << 20, 4 * block_bytes + (2 << 20))))

    pooled = pl.pallas_call(
        _make_pool_kernel(HW, HWC, nk),
        out_shape=jax.ShapeDtypeStruct((R, 2), jnp.float32),
        grid_spec=pltpu.PrefetchScalarGridSpec(
            num_scalar_prefetch=0,
            grid=(nr, nk),
            in_specs=[
                # (RT, HWC) streaming block; reduction axis (k) is innermost.
                pl.BlockSpec((RT, HWC), lambda r, k: (r, k)),
            ],
            # Output block revisited across k (accumulator pattern); written
            # only at the last k step.
            out_specs=pl.BlockSpec((RT, 2), lambda r, k: (r, 0)),
            scratch_shapes=[
                pltpu.VMEM((RT, 1), jnp.float32),  # running sum
                pltpu.VMEM((RT, 1), jnp.float32),  # running max
            ],
        ),
        compiler_params=pltpu.CompilerParams(
            dimension_semantics=("parallel", "arbitrary"),
            vmem_limit_bytes=vmem_limit,
        ),
        cost_estimate=pl.CostEstimate(
            flops=2 * R * HW,  # sum + max per element
            transcendentals=0,
            bytes_accessed=R * HW * itemsize + R * 2 * 4,
        ),
    )(x2)

    pooled = pooled.reshape(B, C, 2)
    avg = pooled[..., 0]                     # (B, C) f32
    mx = pooled[..., 1]                      # (B, C) f32

    # Tiny MLP (two bias-free 1x1 convs) + sigmoid hoisted to XLA as a single
    # batched matmul pair over the stacked (avg, max) rows (M=1 matmuls are a
    # terrible MXU shape inside the kernel).
    stacked = jnp.stack([avg, mx], axis=1)                          # (B, 2, C)
    w1f = w1.astype(jnp.float32)
    w2f = w2.astype(jnp.float32)
    h = jnp.maximum(jnp.einsum("bpc,rc->bpr", stacked, w1f), 0.0)   # fc1 + ReLU
    y = jnp.einsum("bpr,cr->bpc", h, w2f)                           # fc2
    out = jax.nn.sigmoid(y[:, 0] + y[:, 1])                         # (B, C)
    return out.astype(x.dtype).reshape(B, C, 1, 1)


def channel_attention_ref(x, w1, w2):
    """Pure-JAX reference of the PyTorch forward (f32)."""
    xf = x.astype(jnp.float32)
    avg = jnp.mean(xf, axis=(2, 3))                 # AdaptiveAvgPool2d(1)
    mx = jnp.max(xf, axis=(2, 3))                   # AdaptiveMaxPool2d(1)

    def mlp(v):
        h = jnp.maximum(v @ w1.T.astype(jnp.float32), 0.0)
        return h @ w2.T.astype(jnp.float32)

    out = jax.nn.sigmoid(mlp(avg) + mlp(mx))
    return out.reshape(*out.shape, 1, 1)


if __name__ == "__main__":
    # Shapes consistent with the module: inplanes=64, reduction=16 -> C_red=4.
    B, C, H, W = 2, 64, 16, 16
    reduction = 16
    C_red = C // reduction

    key = jax.random.PRNGKey(0)
    kx, k1, k2 = jax.random.split(key, 3)
    x = jax.random.normal(kx, (B, C, H, W), dtype=jnp.float32)
    w1 = jax.random.normal(k1, (C_red, C), dtype=jnp.float32) * 0.1
    w2 = jax.random.normal(k2, (C, C_red), dtype=jnp.float32) * 0.1

    out = jax.block_until_ready(channel_attention(x, w1, w2))
    ref = channel_attention_ref(x, w1, w2)
    assert out.shape == (B, C, 1, 1)
    assert jnp.allclose(out, ref, atol=1e-5, rtol=1e-5), "mismatch vs reference"

    # Forced multi-chunk reduction with evenly dividing chunks (HW % HWC == 0).
    out_mc = jax.block_until_ready(channel_attention(x, w1, w2, hw_chunk_cap=128))
    assert jnp.allclose(out_mc, ref, atol=1e-5, rtol=1e-5), "mismatch (multi-chunk)"

    # Non-aligned spatial size + ragged HW tail + partial row tile (no padding
    # anywhere: exercises in-kernel lane masking and dropped OOB row writes).
    x_odd = jax.random.normal(kx, (3, C, 20, 20), dtype=jnp.float32)
    out_odd = jax.block_until_ready(
        channel_attention(x_odd, w1, w2, hw_chunk_cap=128, row_tile_cap=80))
    ref_odd = channel_attention_ref(x_odd, w1, w2)
    assert jnp.allclose(out_odd, ref_odd, atol=1e-5, rtol=1e-5), "mismatch (odd shapes)"

    # bf16 input path: native-dtype streaming blocks, per-chunk f32 upcast.
    out_bf = jax.block_until_ready(channel_attention(x.astype(jnp.bfloat16), w1, w2))
    assert out_bf.shape == (B, C, 1, 1)
    assert jnp.allclose(out_bf.astype(jnp.float32), ref, atol=5e-2), "mismatch (bf16)"

    print("KERNEL_OK")
</pallas_src>

<mosaic_0001>
module attributes {stable_mosaic.version = 11 : i64} {
  func.func @kernel(%arg0: i32, %arg1: i32, %arg2: memref<64x256xf32, #tpu.memory_space<vmem>>, %arg3: memref<64x2xf32, #tpu.memory_space<vmem>>, %arg4: memref<64x1xf32, #tpu.memory_space<vmem>>, %arg5: memref<64x1xf32, #tpu.memory_space<vmem>>) attributes {dimension_semantics = [#tpu.dimension_semantics<parallel>, #tpu.dimension_semantics<arbitrary>], iteration_bounds = array<i64: 2, 1>, scalar_prefetch = 0 : i64, scratch_operands = 2 : i64, tpu.core_type = #tpu.core_type<tc>, window_params = [{transform_indices = @transform_0, window_bounds = array<i64: 64, 256>}, {transform_indices = @transform_1, window_bounds = array<i64: 64, 2>}]} {
    %c0_i32 = arith.constant 0 : i32
    %0 = arith.cmpi eq, %arg1, %c0_i32 : i32
    %1 = arith.extui %0 : i1 to i32
    %c0_i32_0 = arith.constant 0 : i32
    %2 = arith.cmpi ne, %1, %c0_i32_0 : i32
    scf.if %2 {
      %cst_13 = arith.constant 0.000000e+00 : f32
      %17 = vector.broadcast %cst_13 : f32 to vector<64x1xf32>
      %c0_14 = arith.constant 0 : index
      %c0_15 = arith.constant 0 : index
      %18 = vector.load %arg4[%c0_14, %c0_15] : memref<64x1xf32, #tpu.memory_space<vmem>>, vector<64x1xf32>
      tpu.vector_store %arg4[%c0_14, %c0_15], %17 {strides = array<i32>} : memref<64x1xf32, #tpu.memory_space<vmem>>, vector<64x1xf32>,
      %cst_16 = arith.constant 0xFF800000 : f32
      %19 = vector.broadcast %cst_16 : f32 to vector<64x1xf32>
      %c0_17 = arith.constant 0 : index
      %c0_18 = arith.constant 0 : index
      %20 = vector.load %arg5[%c0_17, %c0_18] : memref<64x1xf32, #tpu.memory_space<vmem>>, vector<64x1xf32>
      tpu.vector_store %arg5[%c0_17, %c0_18], %19 {strides = array<i32>} : memref<64x1xf32, #tpu.memory_space<vmem>>, vector<64x1xf32>,
    } else {
    }
    %c0 = arith.constant 0 : index
    %c0_1 = arith.constant 0 : index
    %3 = vector.load %arg2[%c0, %c0_1] : memref<64x256xf32, #tpu.memory_space<vmem>>, vector<64x256xf32>
    %c0_2 = arith.constant 0 : index
    %c0_3 = arith.constant 0 : index
    %4 = vector.load %arg4[%c0_2, %c0_3] : memref<64x1xf32, #tpu.memory_space<vmem>>, vector<64x1xf32>
    %cst = arith.constant dense<0.000000e+00> : vector<64xf32>
    %5 = vector.multi_reduction <add>, %3, %cst [1] : vector<64x256xf32> to vector<64xf32>
    %6 = vector.shape_cast %5 : vector<64xf32> to vector<64x1xf32>
    %7 = arith.addf %4, %6 : vector<64x1xf32>
    %c0_4 = arith.constant 0 : index
    %c0_5 = arith.constant 0 : index
    %8 = vector.load %arg4[%c0_4, %c0_5] : memref<64x1xf32, #tpu.memory_space<vmem>>, vector<64x1xf32>
    tpu.vector_store %arg4[%c0_4, %c0_5], %7 {strides = array<i32>} : memref<64x1xf32, #tpu.memory_space<vmem>>, vector<64x1xf32>,
    %c0_6 = arith.constant 0 : index
    %c0_7 = arith.constant 0 : index
    %9 = vector.load %arg5[%c0_6, %c0_7] : memref<64x1xf32, #tpu.memory_space<vmem>>, vector<64x1xf32>
    %cst_8 = arith.constant dense<0xFF800000> : vector<64xf32>
    %10 = vector.multi_reduction <maximumf>, %3, %cst_8 [1] : vector<64x256xf32> to vector<64xf32>
    %11 = vector.shape_cast %10 : vector<64xf32> to vector<64x1xf32>
    %12 = arith.maximumf %9, %11 : vector<64x1xf32>
    %c0_9 = arith.constant 0 : index
    %c0_10 = arith.constant 0 : index
    %13 = vector.load %arg5[%c0_9, %c0_10] : memref<64x1xf32, #tpu.memory_space<vmem>>, vector<64x1xf32>
    tpu.vector_store %arg5[%c0_9, %c0_10], %12 {strides = array<i32>} : memref<64x1xf32, #tpu.memory_space<vmem>>, vector<64x1xf32>,
    %c0_i32_11 = arith.constant 0 : i32
    %14 = arith.cmpi eq, %arg1, %c0_i32_11 : i32
    %15 = arith.extui %14 : i1 to i32
    %c0_i32_12 = arith.constant 0 : i32
    %16 = arith.cmpi ne, %15, %c0_i32_12 : i32
    scf.if %16 {
      %c0_13 = arith.constant 0 : index
      %c0_14 = arith.constant 0 : index
      %17 = vector.load %arg4[%c0_13, %c0_14] : memref<64x1xf32, #tpu.memory_space<vmem>>, vector<64x1xf32>
      %cst_15 = arith.constant 3.906250e-03 : f32
      %18 = vector.broadcast %cst_15 : f32 to vector<64x1xf32>
      %19 = arith.mulf %17, %18 : vector<64x1xf32>
      %c0_16 = arith.constant 0 : index
      %c0_17 = arith.constant 0 : index
      %20 = vector.load %arg3[%c0_16, %c0_17] : memref<64x2xf32, #tpu.memory_space<vmem>>, vector<64x1xf32>
      tpu.vector_store %arg3[%c0_16, %c0_17], %19 {strides = array<i32>} : memref<64x2xf32, #tpu.memory_space<vmem>>, vector<64x1xf32>,
      %c0_18 = arith.constant 0 : index
      %c0_19 = arith.constant 0 : index
      %21 = vector.load %arg5[%c0_18, %c0_19] : memref<64x1xf32, #tpu.memory_space<vmem>>, vector<64x1xf32>
      %c0_20 = arith.constant 0 : index
      %c1 = arith.constant 1 : index
      %22 = vector.load %arg3[%c0_20, %c1] : memref<64x2xf32, #tpu.memory_space<vmem>>, vector<64x1xf32>
      tpu.vector_store %arg3[%c0_20, %c1], %21 {strides = array<i32>} : memref<64x2xf32, #tpu.memory_space<vmem>>, vector<64x1xf32>,
    } else {
    }
    return
  }
  func.func @transform_0(%arg0: i32, %arg1: i32) -> (i32, i32) {
    %c0_i32 = arith.constant 0 : i32
    return %arg0, %arg1 : i32, i32
  }
  func.func @transform_1(%arg0: i32, %arg1: i32) -> (i32, i32) {
    %c0_i32 = arith.constant 0 : i32
    %c0_i32_0 = arith.constant 0 : i32
    return %arg0, %c0_i32 : i32, i32
  }
}

</mosaic_0001>

<bundles_post_ra>
// kernel: tpu_custom_call.1
= control target key start
LH: loop header
LB: loop body
LE: loop exit
PB: predicated region body
PF: predicated region fallthrough
CT: control target
= control target key end

     0   :  { %6 = vsyncpa [#allocation5], 0  ;;  %s835_s0 = inlined_call_operand.hbm [shape: f32[128,256], index: 0, kind: input, shape index: {}]   ;;  %s836_s1 = inlined_call_operand.vmem [shape: f32[128,2], index: 1, kind: output, shape index: {}]  }
   0x1   :  { %8 = vsyncpa [#allocation5 + $0x1], 0  ;;  %s620_s6 = smov 0   ;;  %s622_s7 = smov 0  }
   0x2   :  { %s624_s8 = smov 0   ;;  %s626_s9 = smov 0  }
   0x3   :  { %s628_s10 = smov 0   ;;  %s630_s11 = smov 0  }
   0x4 LB: > { %s446_s12 = sadd.s32 4294967295, %s602_s11   ;;  %s26_s13 = sadd.s32 1, %s598_s10  ;;  %s602_s11 = sphi %s630_s11, %s14_s11   ;;  %s598_s10 = sphi %s628_s10, %s844_s10   ;;  %s594_s9 = sphi %s626_s9, %s843_s9   ;;  %s590_s8 = sphi %s624_s8, %s842_s8   ;;  %s586_s7 = sphi %s622_s7, %s841_s7   ;;  %s582_s6 = sphi %s620_s6, %s840_s6  }
   0x5   : > { %p28_p0 = scmp.ge.s32.totalorder %s26_s13, 2  ;;  %s35_s14 = sadd.s32 1, %s590_s8 }
   0x6   : > { %p42_p1 = scmp.ne.s32.totalorder %s590_s8, %s586_s7  ;;  %p43_p2 = scmp.eq.s32.totalorder %s602_s11, 0 }
   0x7   : > { %s846_s13 = smov (%p28_p0, %s26_s13), 0  ;;  %p48_p4 = scmp.ne.s32.totalorder %s586_s7, %s582_s6 }
   0x8   : > { %p656_p3 = por %p43_p2, %p42_p1  ;;  %s30_s16 = ssub.s32 %s598_s10, %s846_s13 }
   0x9   : > { %p49_p5 = scmp.eq.s32.totalorder %s446_s12, 0  ;;  %p33_p6 = scmp.eq.s32.totalorder %s30_s16, 0 }
   0xa   : > { %p468_p8 = scmp.lt.s32.totalorder %s602_s11, 2  ;;  %s98_s19 = sand.u32 1, %s590_s8  }
   0xb   : > { %p663_p7 = por %p49_p5, %p48_p4  ;;  %s461_s20 = sshll.u32 %s598_s10, 11 }
   0xc   : > { %s669_s18 = scalar_select %p33_p6, %s590_s8, %s35_s14  }
   0xd   : > { %s450_s21 = sshll.u32 %s98_s19, 7  ;;  %s676_s24 = scalar_lea.hbm %s835_s0, %s461_s20 }
   0xe   : > { %s102_s25 = scalar_lea.vmem [#allocation4], %s450_s21  ;;  %p680_p9 = pnand %p468_p8, %p656_p3 }
   0xf   : > { %s112_s26 = sshll.u32 %s102_s25, 4  ;;  %s686_s28 = scalar_lea.sflag [#allocation5], %s98_s19  ;;  %s684_s26 = int_to_ptr.vmem [resolvable:$true] %s112_s26 }
  0x10   : > { %s522_s29 = scalar_lea.hbm %s676_s24, 2048  ;;  %p524_p11 = pneg %p680_p9 }
  0x11   : > { %p523_p10 = scmp.ne.s32.totalorder %s676_s24, %s522_s29  ;;  %s527_s3 = scalar_lea.hbm %s835_s0, 4096 }
  0x12   : > { %p528_p0 = scmp.lt.u32.totalorder %s676_s24, %s835_s0  ;;  %p529_p1 = scmp.lt.u32.totalorder %s527_s3, %s522_s29 }
  0x13   : > { %p525_p12 = pnand %p524_p11, %p523_p10  ;;  %p531_p3 = scmp.lt.u32.totalorder %s522_s29, %s676_s24 }
  0x14   : > { %p530_p2 = por %p529_p1, %p528_p0 }
  0x15   : > { %p526_p13 = pneg %p525_p12 }
  0x16   : > { %p532_p4 = por %p531_p3, %p530_p2 }
  0x18   : > { %p533_p5 = pnand %p532_p4, %p526_p13 }
  0x1a   : > { %536 = shalt.err (!%p533_p5)
}
  0x1b   : > { %s537_s6 = scalar_lea.vmem %s684_s26, 2048  ;;  %s604_s12 = smov [#allocation4]  }
  0x1c   : > { %p538_p6 = scmp.ne.s32.totalorder %s684_s26, %s537_s6  ;;  %s542_s14 = sshll.u32 %s604_s12, 4  ;;  %s543_s14 = int_to_ptr.vmem [resolvable:$false] %s542_s14 }
  0x1d   : > { %s544_s15 = scalar_lea.vmem %s543_s14, 4096  ;;  %p545_p12 = scmp.lt.s32.totalorder %s684_s26, %s543_s14 }
  0x1e   : > { %p540_p8 = pnand %p538_p6, %p524_p11  ;;  %p546_p0 = scmp.lt.s32.totalorder %s544_s15, %s537_s6 }
  0x20   : > { %p541_p10 = pneg %p540_p8  ;;  %p547_p1 = por %p546_p0, %p545_p12 }
  0x22   : > { %p548_p2 = pnand %p547_p1, %p541_p10 }
  0x24   : > { %551 = shalt.err (!%p548_p2)
}
  0x25   : > { %s605_s16 = smov 256   ;;  %s606_s19 = smov 16  }
  0x26   : > { %467 = dma.hbm_to_vmem [thread:$0]  (!%p680_p9), %s676_s24, 2048, %s684_s26, %s686_s28, %s605_s16, %s605_s16, %s606_s19  }
  0x27   : > { %p454_p11 = scmp.ge.s32.totalorder %s602_s11, 1  ;;  %p120_p13 = scmp.lt.s32.totalorder %s602_s11, 3 }
  0x29   : > { %p121_p3 = pnand %p454_p11, %p120_p13 }
  0x2a   : > { %s126_s20 = sand.u32 (!%p121_p3), 1, %s586_s7  }
  0x2b   : > { %124 = sbr.rel (%p121_p3) target bundleno = 342 (0x156), region = 24  ;;  %s455_s21 = sshll.u32 (!%p121_p3), %s126_s20, 7 }
  0x2c   : > { %s127_s22 = scalar_lea.sflag (!%p121_p3), [#allocation5], %s126_s20  ;;  %s717_s23 = scalar_lea.vmem (!%p121_p3), [#allocation4], %s455_s21 }
  0x32   : > { %577 = dma.done.wait (%p663_p7), %s127_s22, 2048  }
  0x33   : > { %579 = vsyncadd (%p663_p7), %s127_s22, 4294965248  ;;  %vm161_vm0 = vcmask 7168   ;;  %v607_v0 = vmov -inf   ;;  %v178_v1 = vld [vmem:[%s717_s23] sm:$0xff]  ;;  %v179_v2 = vld [vmem:[%s717_s23 + $0x8] sm:$0xff]  ;;  %v608_v33 = vmov 0.0  }
  0x34   : > { %170 = vst.msk [vmem:[#allocation3] sm:$0xff] %vm161_vm0, %v607_v0  ;;  %171 = vst.msk [vmem:[#allocation3 + $0x8] sm:$0xff] %vm161_vm0, %v607_v0  ;;  %v180_v3 = vld [vmem:[%s717_s23 + $0x10] sm:$0xff]  ;;  %v251_v4 = vmax.f32 %v178_v1, %v179_v2  ;;  %v181_v5 = vld [vmem:[%s717_s23 + $0x18] sm:$0xff]  ;;  %v202_v25 = vadd.f32 %v179_v2, %v178_v1  ;;  %s609_s17 = smov 1   ;;  %s456_s24 = sshll.u32 %s594_s9, 3 }
  0x35   : > { %172 = vst.msk [vmem:[#allocation3 + $0x10] sm:$0xff] %vm161_vm0, %v607_v0  ;;  %173 = vst.msk [vmem:[#allocation3 + $0x18] sm:$0xff] %vm161_vm0, %v607_v0  ;;  %v182_v6 = vld [vmem:[%s717_s23 + $0x20] sm:$0xff]  ;;  %v183_v7 = vld [vmem:[%s717_s23 + $0x28] sm:$0xff]  ;;  %v254_v11 = vmax.f32 %v180_v3, %v181_v5  ;;  %v205_v26 = vadd.f32 %v181_v5, %v180_v3  ;;  %p152_p7 = scmp.lt.s32.totalorder %s456_s24, 15  ;;  %vm358_vm1 = vcmask 15368  }
  0x36   : > { %174 = vst.msk [vmem:[#allocation3 + $0x20] sm:$0xff] %vm161_vm0, %v607_v0  ;;  %175 = vst.msk [vmem:[#allocation3 + $0x28] sm:$0xff] %vm161_vm0, %v607_v0  ;;  %v257_v8 = vmax.f32 %v182_v6, %v183_v7  ;;  %v184_v9 = vld [vmem:[%s717_s23 + $0x30] sm:$0xff]  ;;  %v185_v10 = vld [vmem:[%s717_s23 + $0x38] sm:$0xff]  ;;  %252 = vmax.xlane.f32.xlu0 %v251_v4  ;;  %v208_v27 = vadd.f32 %v183_v7, %v182_v6 }
  0x37   : > { %176 = vst.msk [vmem:[#allocation3 + $0x30] sm:$0xff] %vm161_vm0, %v607_v0  ;;  %177 = vst.msk [vmem:[#allocation3 + $0x38] sm:$0xff] %vm161_vm0, %v607_v0  ;;  %v260_v12 = vmax.f32 %v184_v9, %v185_v10  ;;  %v186_v13 = vld [vmem:[%s717_s23 + $0x40] sm:$0xff]  ;;  %v187_v14 = vld [vmem:[%s717_s23 + $0x48] sm:$0xff]  ;;  %v211_v28 = vadd.f32 %v185_v10, %v184_v9  ;;  %s848_s24 = smov (!%p152_p7, %s456_s24), 15 }
  0x38   : > { %258 = vmax.xlane.f32.xlu1 %v257_v8  ;;  %v188_v15 = vld [vmem:[%s717_s23 + $0x50] sm:$0xff]  ;;  %v189_v16 = vld [vmem:[%s717_s23 + $0x58] sm:$0xff]  ;;  %v263_v17 = vmax.f32 %v186_v13, %v187_v14  ;;  %v190_v19 = vld [vmem:[%s717_s23 + $0x60] sm:$0xff]  ;;  %v214_v29 = vadd.f32 %v187_v14, %v186_v13  ;;  %162 = vst.msk [vmem:[#allocation2] sm:$0xff] %vm161_vm0, %v608_v33  ;;  %s457_s9 = sshll.u32 %s848_s24, 3 }
  0x39   : > { %v266_v18 = vmax.f32 %v188_v15, %v189_v16  ;;  %v191_v20 = vld [vmem:[%s717_s23 + $0x68] sm:$0xff]  ;;  %v192_v21 = vld [vmem:[%s717_s23 + $0x70] sm:$0xff]  ;;  %v193_v22 = vld [vmem:[%s717_s23 + $0x78] sm:$0xff]  ;;  %v217_v30 = vadd.f32 %v189_v16, %v188_v15  ;;  %163 = vst.msk [vmem:[#allocation2 + $0x8] sm:$0xff] %vm161_vm0, %v608_v33  ;;  %s777_s27 = scalar_lea.vmem %s836_s1, %s457_s9 }
  0x3a   : > { %255 = vmax.xlane.f32.xlu0 %v254_v11  ;;  %v269_v23 = vmax.f32 %v190_v19, %v191_v20  ;;  %v272_v24 = vmax.f32 %v192_v21, %v193_v22  ;;  %v220_v31 = vadd.f32 %v191_v20, %v190_v19  ;;  %v223_v32 = vadd.f32 %v193_v22, %v192_v21 }
  0x3b   : > { %164 = vst.msk [vmem:[#allocation2 + $0x10] sm:$0xff] %vm161_vm0, %v608_v33  ;;  %165 = vst.msk [vmem:[#allocation2 + $0x18] sm:$0xff] %vm161_vm0, %v608_v33  ;;  %v243_v34 = vld [vmem:[#allocation3] sm:$0xff]  ;;  %v244_v39 = vld [vmem:[#allocation3 + $0x8] sm:$0xff] }
  0x3c   : > { %261 = vmax.xlane.f32.xlu1 %v260_v12  ;;  %166 = vst.msk [vmem:[#allocation2 + $0x20] sm:$0xff] %vm161_vm0, %v608_v33  ;;  %167 = vst.msk [vmem:[#allocation2 + $0x28] sm:$0xff] %vm161_vm0, %v608_v33  ;;  %v245_v35 = vld [vmem:[#allocation3 + $0x10] sm:$0xff]  ;;  %v246_v41 = vld [vmem:[#allocation3 + $0x18] sm:$0xff] }
  0x3d   : > { %168 = vst.msk [vmem:[#allocation2 + $0x30] sm:$0xff] %vm161_vm0, %v608_v33  ;;  %169 = vst.msk [vmem:[#allocation2 + $0x38] sm:$0xff] %vm161_vm0, %v608_v33  ;;  %v247_v46 = vld [vmem:[#allocation3 + $0x20] sm:$0xff]  ;;  %v248_v47 = vld [vmem:[#allocation3 + $0x28] sm:$0xff] }
  0x3e   : > { %264 = vmax.xlane.f32.xlu0 %v263_v17  ;;  %v249_v53 = vld [vmem:[#allocation3 + $0x30] sm:$0xff]  ;;  %v250_v54 = vld [vmem:[#allocation3 + $0x38] sm:$0xff] }
  0x3f   : > { %v194_v60 = vld [vmem:[#allocation2] sm:$0xff] }
  0x40   : > { %267 = vmax.xlane.f32.xlu1 %v266_v18  ;;  %v195_v61 = vld [vmem:[#allocation2 + $0x8] sm:$0xff] }
  0x42   : > { %270 = vmax.xlane.f32.xlu0 %v269_v23  ;;  %v196_v4 = vld [vmem:[#allocation2 + $0x10] sm:$0xff]  ;;  %v197_v5 = vld [vmem:[#allocation2 + $0x18] sm:$0xff] }
  0x43   : > { %v198_v12 = vld [vmem:[#allocation2 + $0x20] sm:$0xff]  ;;  %v199_v13 = vld [vmem:[#allocation2 + $0x28] sm:$0xff] }
  0x44   : > { %273 = vmax.xlane.f32.xlu1 %v272_v24  ;;  %v200_v19 = vld [vmem:[#allocation2 + $0x30] sm:$0xff]  ;;  %v201_v21 = vld [vmem:[#allocation2 + $0x38] sm:$0xff] }
  0x46   : > { %203 = vadd.xlane.f32.xlu0 %v202_v25 }
  0x48   : > { %206 = vadd.xlane.f32.xlu1 %v205_v26 }
  0x4a   : > { %209 = vadd.xlane.f32.xlu0 %v208_v27 }
  0x4c   : > { %212 = vadd.xlane.f32.xlu1 %v211_v28 }
  0x4e   : > { %215 = vadd.xlane.f32.xlu0 %v214_v29 }
  0x50   : > { %218 = vadd.xlane.f32.xlu1 %v217_v30 }
  0x52   : > { %221 = vadd.xlane.f32.xlu0 %v220_v31 }
  0x54   : > { %224 = vadd.xlane.f32.xlu1 %v223_v32 }
  0xc3   : > { %v253_v36 = vpop.xlane.xlu0 %252 }
  0xc4   : > { %v275_v37 = vmax.f32 %v243_v34, %v253_v36 }
  0xc5   : > { %v259_v38 = vpop.xlane.xlu1 %258 }
  0xc6   : > { %v277_v40 = vmax.f32 %v245_v35, %v259_v38  ;;  %283 = vst.msk [vmem:[#allocation3] sm:$0xff] %vm161_vm0, %v275_v37 }
  0xc7   : > { %v256_v42 = vpop.xlane.xlu0 %255 }
  0xc8   : > { %285 = vst.msk [vmem:[#allocation3 + $0x10] sm:$0xff] %vm161_vm0, %v277_v40  ;;  %v276_v43 = vmax.f32 %v244_v39, %v256_v42 }
  0xc9   : > { %v262_v44 = vpop.xlane.xlu1 %261 }
  0xca   : > { %v278_v45 = vmax.f32 %v246_v41, %v262_v44  ;;  %284 = vst.msk [vmem:[#allocation3 + $0x8] sm:$0xff] %vm161_vm0, %v276_v43 }
  0xcb   : > { %v265_v48 = vpop.xlane.xlu0 %264 }
  0xcc   : > { %286 = vst.msk [vmem:[#allocation3 + $0x18] sm:$0xff] %vm161_vm0, %v278_v45  ;;  %v279_v50 = vmax.f32 %v247_v46, %v265_v48 }
  0xcd   : > { %v268_v49 = vpop.xlane.xlu1 %267  ;;  %v318_v51 = vld [vmem:[#allocation3] sm:$0xff] }
  0xce   : > { %v280_v52 = vmax.f32 %v248_v47, %v268_v49  ;;  %334 = vrot.lane.b32.xlu0 %v318_v51, %s609_s17  ;;  %287 = vst.msk [vmem:[#allocation3 + $0x20] sm:$0xff] %vm161_vm0, %v279_v50 }
  0xcf   : > { %v271_v55 = vpop.xlane.xlu0 %270  ;;  %v320_v62 = vld [vmem:[#allocation3 + $0x10] sm:$0xff] }
  0xd0   : > { %288 = vst.msk [vmem:[#allocation3 + $0x28] sm:$0xff] %vm161_vm0, %v280_v52  ;;  %v281_v57 = vmax.f32 %v249_v53, %v271_v55 }
  0xd1   : > { %v274_v56 = vpop.xlane.xlu1 %273  ;;  %v319_v58 = vld [vmem:[#allocation3 + $0x8] sm:$0xff] }
  0xd2   : > { %v282_v59 = vmax.f32 %v250_v54, %v274_v56  ;;  %336 = vrot.lane.b32.xlu1 %v319_v58, %s609_s17  ;;  %289 = vst.msk [vmem:[#allocation3 + $0x30] sm:$0xff] %vm161_vm0, %v281_v57 }
  0xd3   : > { %v204_v63 = vpop.xlane.xlu0 %203  ;;  %v321_v6 = vld [vmem:[#allocation3 + $0x18] sm:$0xff] }
  0xd4   : > { %290 = vst.msk [vmem:[#allocation3 + $0x38] sm:$0xff] %vm161_vm0, %v282_v59  ;;  %v226_v0 = vadd.f32 %v204_v63, %v194_v60 }
  0xd5   : > { %v207_v1 = vpop.xlane.xlu1 %206  ;;  %v322_v2 = vld [vmem:[#allocation3 + $0x20] sm:$0xff] }
  0xd6   : > { %v227_v3 = vadd.f32 %v207_v1, %v195_v61  ;;  %338 = vrot.lane.b32.xlu1 %v320_v62, %s609_s17  ;;  %342 = vrot.lane.b32.xlu0 %v322_v2, %s609_s17  ;;  %235 = vst.msk [vmem:[#allocation2] sm:$0xff] %vm161_vm0, %v226_v0 }
  0xd7   : > { %v210_v7 = vpop.xlane.xlu0 %209  ;;  %v323_v14 = vld [vmem:[#allocation3 + $0x28] sm:$0xff] }
  0xd8   : > { %236 = vst.msk [vmem:[#allocation2 + $0x8] sm:$0xff] %vm161_vm0, %v227_v3  ;;  %v228_v8 = vadd.f32 %v210_v7, %v196_v4 }
  0xd9   : > { %v213_v9 = vpop.xlane.xlu1 %212  ;;  %v324_v10 = vld [vmem:[#allocation3 + $0x30] sm:$0xff] }
  0xda   : > { %v229_v11 = vadd.f32 %v213_v9, %v197_v5  ;;  %340 = vrot.lane.b32.xlu1 %v321_v6, %s609_s17  ;;  %346 = vrot.lane.b32.xlu0 %v324_v10, %s609_s17  ;;  %237 = vst.msk [vmem:[#allocation2 + $0x10] sm:$0xff] %vm161_vm0, %v228_v8 }
  0xdb   : > { %v216_v15 = vpop.xlane.xlu0 %215  ;;  %v325_v24 = vld [vmem:[#allocation3 + $0x38] sm:$0xff] }
  0xdc   : > { %238 = vst.msk [vmem:[#allocation2 + $0x18] sm:$0xff] %vm161_vm0, %v229_v11  ;;  %v230_v16 = vadd.f32 %v216_v15, %v198_v12 }
  0xdd   : > { %v219_v17 = vpop.xlane.xlu1 %218  ;;  %v294_v20 = vld [vmem:[#allocation2] sm:$0xff] }
  0xde   : > { %v231_v18 = vadd.f32 %v219_v17, %v199_v13  ;;  %344 = vrot.lane.b32.xlu1 %v323_v14, %s609_s17  ;;  %239 = vst.msk [vmem:[#allocation2 + $0x20] sm:$0xff] %vm161_vm0, %v230_v16  ;;  %v302_v22 = vmul.f32 0.00390625, %v294_v20 }
  0xdf   : > { %v295_v23 = vld [vmem:[#allocation2 + $0x8] sm:$0xff]  ;;  %v222_v25 = vpop.xlane.xlu0 %221 }
  0xe0   : > { %240 = vst.msk [vmem:[#allocation2 + $0x28] sm:$0xff] %vm161_vm0, %v231_v18  ;;  %v303_v26 = vmul.f32 0.00390625, %v295_v23  ;;  %v232_v27 = vadd.f32 %v222_v25, %v200_v19  ;;  %310 = vst.msk [vmem:[%s777_s27] sm:$0xff] %vm161_vm0, %v302_v22 }
  0xe1   : > { %v225_v28 = vpop.xlane.xlu1 %224  ;;  %v296_v30 = vld [vmem:[#allocation2 + $0x10] sm:$0xff] }
  0xe2   : > { %v233_v29 = vadd.f32 %v225_v28, %v201_v21  ;;  %311 = vst.msk [vmem:[%s777_s27 + $0x8] sm:$0xff] %vm161_vm0, %v303_v26  ;;  %348 = vrot.lane.b32.xlu1 %v325_v24, %s609_s17  ;;  %241 = vst.msk [vmem:[#allocation2 + $0x30] sm:$0xff] %vm161_vm0, %v232_v27  ;;  %v304_v31 = vmul.f32 0.00390625, %v296_v30 }
  0xe3   : > { %v297_v32 = vld [vmem:[#allocation2 + $0x18] sm:$0xff] }
  0xe4   : > { %242 = vst.msk [vmem:[#allocation2 + $0x38] sm:$0xff] %vm161_vm0, %v233_v29  ;;  %v305_v33 = vmul.f32 0.00390625, %v297_v32  ;;  %312 = vst.msk [vmem:[%s777_s27 + $0x10] sm:$0xff] %vm161_vm0, %v304_v31 }
  0xe5   : > { %v298_v34 = vld [vmem:[#allocation2 + $0x20] sm:$0xff] }
  0xe6   : > { %313 = vst.msk [vmem:[%s777_s27 + $0x18] sm:$0xff] %vm161_vm0, %v305_v33  ;;  %v306_v36 = vmul.f32 0.00390625, %v298_v34 }
  0xe7   : > { %v299_v35 = vld [vmem:[#allocation2 + $0x28] sm:$0xff] }
  0xe8   : > { %v307_v37 = vmul.f32 0.00390625, %v299_v35  ;;  %314 = vst.msk [vmem:[%s777_s27 + $0x20] sm:$0xff] %vm161_vm0, %v306_v36 }
  0xe9   : > { %v300_v38 = vld [vmem:[#allocation2 + $0x30] sm:$0xff] }
  0xea   : > { %315 = vst.msk [vmem:[%s777_s27 + $0x28] sm:$0xff] %vm161_vm0, %v307_v37  ;;  %v308_v40 = vmul.f32 0.00390625, %v300_v38 }
  0xeb   : > { %v301_v39 = vld [vmem:[#allocation2 + $0x38] sm:$0xff] }
  0xec   : > { %v309_v41 = vmul.f32 0.00390625, %v301_v39  ;;  %316 = vst.msk [vmem:[%s777_s27 + $0x30] sm:$0xff] %vm161_vm0, %v308_v40 }
  0xee   : > { %317 = vst.msk [vmem:[%s777_s27 + $0x38] sm:$0xff] %vm161_vm0, %v309_v41 }
 0x140   : > { %v335_v42 = vpop.permute.xlu0 %334 }
 0x141   : > { %359 = vst.msk [vmem:[%s777_s27] sm:$0xff] %vm358_vm1, %v335_v42 }
 0x144   : > { %v337_v43 = vpop.permute.xlu1 %336 }
 0x145   : > { %360 = vst.msk [vmem:[%s777_s27 + $0x8] sm:$0xff] %vm358_vm1, %v337_v43 }
 0x148   : > { %v339_v44 = vpop.permute.xlu1 %338  ;;  %v343_v45 = vpop.permute.xlu0 %342 }
 0x149   : > { %361 = vst.msk [vmem:[%s777_s27 + $0x10] sm:$0xff] %vm358_vm1, %v339_v44  ;;  %363 = vst.msk [vmem:[%s777_s27 + $0x20] sm:$0xff] %vm358_vm1, %v343_v45 }
 0x14c   : > { %v341_v46 = vpop.permute.xlu1 %340  ;;  %v347_v47 = vpop.permute.xlu0 %346 }
 0x14d   : > { %362 = vst.msk [vmem:[%s777_s27 + $0x18] sm:$0xff] %vm358_vm1, %v341_v46  ;;  %365 = vst.msk [vmem:[%s777_s27 + $0x30] sm:$0xff] %vm358_vm1, %v347_v47 }
 0x150   : > { %v345_v48 = vpop.permute.xlu1 %344 }
 0x151   : > { %364 = vst.msk [vmem:[%s777_s27 + $0x28] sm:$0xff] %vm358_vm1, %v345_v48 }
 0x154   : > { %v349_v49 = vpop.permute.xlu1 %348 }
 0x155   : > { %366 = vst.msk [vmem:[%s777_s27 + $0x38] sm:$0xff] %vm358_vm1, %v349_v49 }
 0x156 PF: > { %s14_s11 = sadd.s32 1, %s602_s11   ;;  %s840_s6 = smov %s586_s7 }
 0x157   : > { %p11_p9 = scmp.ge.s32.totalorder %s14_s11, 4   ;;  %s841_s7 = smov %s590_s8 }
 0x158   : > { %s842_s8 = smov %s669_s18  ;;  %s843_s9 = smov %s598_s10 }
 0x159   : > { %s844_s10 = smov %s846_s13  ;;  %13 = sbr.rel (!%p11_p9) target bundleno = 4 (0x4), region = 72 }
 0x160   :  { %389 = vsyncpa [#allocation5], 1 }
 0x161   :  { %391 = vsyncpa [#allocation5 + $0x1], 1 }

</bundles_post_ra>
